<compile_context>
chip_gen: v7x
topology: tpu7x:2x2x1
jax: 0.10.0
libtpu: 0.0.40
codegen_flags: <defaults>
</compile_context>

<pallas_src>
import functools

import jax
import jax.numpy as jnp
import numpy as np
from jax.experimental import pallas as pl
from jax.experimental.pallas import tpu as pltpu


# ------------------------------- fused kernel -------------------------------
def _bottleneck_kernel(x_ref, w1_ref, b1_ref, w2_ref, b2_ref, o_ref, *, W, HW, use_add):
    # x_ref:  (Cin, HW_blk) bf16   B_blk whole images, channels-first, flat spatial
    # w1_ref: (Chid_p, Cin) bf16   1x1 weight, BN1 scale folded, Chid padded to 16k
    # b1_ref: (Chid_p, 1)   f32    BN1 bias (0 in padded rows)
    # w2_ref: (3, Cout, 3*Chid_p) bf16   3x3 weight, [ky][o, kx*Chid_p + c], BN2 folded
    # b2_ref: (Cout, 1)     f32    BN2 bias
    # o_ref:  (Cout, HW_blk) f32
    x = x_ref[...]
    hw_blk = x.shape[1]

    # ---- stage 1: 1x1 conv (+ folded BN) + SiLU; bf16 operands, f32 accumulate ----
    y1 = jnp.dot(w1_ref[...], x, preferred_element_type=jnp.float32)   # (Chid_p, HW_blk)
    y1 = y1 + b1_ref[...]
    y1 = y1 * jax.nn.sigmoid(y1)                                       # f32

    # ---- boundary-validity masks, generated in-register (hoisted above taps) ----
    pos = jax.lax.broadcasted_iota(jnp.int32, (1, hw_blk), 1)
    p_img = pos % HW                                  # position within its image
    col = pos % W                                     # column within its row
    row_ok = (p_img >= W, None, p_img < HW - W)       # ky = 0, 1, 2
    col_ok = (col > 0, None, col < W - 1)             # kx = 0, 1, 2

    # ---- stage 2: 3x3 "same" conv as 3 accumulated K=3*Chid_p matmuls (per ky) ----
    # Taps are lane rotations of y1 (XLU) masked at image/row/column boundaries; the
    # masks also kill the wrap-around across image boundaries within the block.
    acc = None
    for ky in range(3):
        taps = []
        for kx in range(3):
            off = (ky - 1) * W + (kx - 1)
            if off == 0:
                tap = y1
            else:
                tap = pltpu.roll(y1, shift=(-off) % hw_blk, axis=1)    # tap[p] = y1[p+off]
            rm, cm = row_ok[ky], col_ok[kx]
            m = rm if cm is None else (cm if rm is None else rm & cm)
            if m is not None:
                tap = jnp.where(m, tap, 0.0)
            taps.append(tap)
        rhs = jnp.concatenate(taps, axis=0).astype(jnp.bfloat16)       # (3*Chid_p, HW_blk)
        d = jnp.dot(w2_ref[ky], rhs, preferred_element_type=jnp.float32)
        acc = d if acc is None else acc + d

    y = acc + b2_ref[...]
    y = y * jax.nn.sigmoid(y)                                          # (Cout, HW_blk) f32
    if use_add:
        y = y + x.astype(jnp.float32)                                  # residual (Cin == Cout)
    o_ref[...] = y.astype(o_ref.dtype)


# ------------------------------- module wrapper ------------------------------
def fold_bn(gamma, beta, mean, var, eps=1e-3):       # BatchNorm2d(eps=0.001) per module spec
    scale = gamma / jnp.sqrt(var + eps)
    bias = beta - mean * scale
    return scale, bias


def _round_up(v, m):
    return ((v + m - 1) // m) * m


def _choose_batch_block(N, HW, target_lanes=2048):
    """Images per grid step: amortize per-step overhead, keep >=2 steps for v7x's 2 TCs."""
    cap = max(1, target_lanes // max(HW, 1))
    divs = [b for b in range(1, N + 1) if N % b == 0 and b <= cap] or [1]
    pref = [b for b in divs if N // b >= 2]
    return max(pref) if pref else max(divs)


def bottleneck_forward(x_nchw, params, shortcut=True):
    N, Cin, H, W = x_nchw.shape
    Cout, Chid = params["w2"].shape[0], params["w2"].shape[1]
    HW = H * W
    use_add = bool(shortcut and (Cin == Cout))
    Chid_p = _round_up(Chid, 16)                      # bf16 sublane-tile aligned hidden dim

    # channels-first flat (C, N*HW): one wide lane-dense spatial axis (layout plumbing
    # done by XLA in the wrapper), matmul operands in bf16.
    x2d = jnp.transpose(x_nchw, (1, 0, 2, 3)).reshape(Cin, N * HW).astype(jnp.bfloat16)

    s1, b1 = fold_bn(params["bn1_gamma"], params["bn1_beta"],
                     params["bn1_mean"], params["bn1_var"])
    s2, b2 = fold_bn(params["bn2_gamma"], params["bn2_beta"],
                     params["bn2_mean"], params["bn2_var"])

    # conv1: (Chid, Cin, 1, 1) -> (Chid_p, Cin), BN1 scale folded, rows zero-padded.
    w1f = params["w1"][:, :, 0, 0] * s1[:, None]
    w1f = jnp.pad(w1f, ((0, Chid_p - Chid), (0, 0))).astype(jnp.bfloat16)
    b1v = jnp.pad(b1[:, None], ((0, Chid_p - Chid), (0, 0))).astype(jnp.float32)

    # conv2: (Cout, Chid, 3, 3) -> (ky, Cout, kx*Chid_p + c), BN2 scale folded,
    # padded channels are zero columns (match the kernel's per-ky kx-major stacking).
    w2s = params["w2"] * s2[:, None, None, None]
    w2t = jnp.transpose(w2s, (2, 3, 0, 1))                              # (ky, kx, Cout, Chid)
    w2t = jnp.pad(w2t, ((0, 0), (0, 0), (0, 0), (0, Chid_p - Chid)))
    w2f = jnp.transpose(w2t, (0, 2, 1, 3)).reshape(3, Cout, 3 * Chid_p).astype(jnp.bfloat16)
    b2v = b2[:, None].astype(jnp.float32)

    B_blk = _choose_batch_block(N, HW)
    HW_blk = B_blk * HW
    grid = (N // B_blk,)

    kernel = functools.partial(_bottleneck_kernel, W=W, HW=HW, use_add=use_add)
    out = pl.pallas_call(
        kernel,
        out_shape=jax.ShapeDtypeStruct((Cout, N * HW), jnp.float32),
        grid=grid,
        in_specs=[
            pl.BlockSpec((Cin, HW_blk), lambda g: (0, g)),
            pl.BlockSpec((Chid_p, Cin), lambda g: (0, 0)),
            pl.BlockSpec((Chid_p, 1), lambda g: (0, 0)),
            pl.BlockSpec((3, Cout, 3 * Chid_p), lambda g: (0, 0, 0)),
            pl.BlockSpec((Cout, 1), lambda g: (0, 0)),
        ],
        out_specs=pl.BlockSpec((Cout, HW_blk), lambda g: (0, g)),
        compiler_params=pltpu.CompilerParams(
            dimension_semantics=("parallel",),
            vmem_limit_bytes=32 * 1024 * 1024,        # explicit; fits v7x's 64 MiB VMEM
        ),
    )(x2d, w1f, b1v, w2f, b2v)
    return jnp.transpose(out.reshape(Cout, N, H, W), (1, 0, 2, 3))


# ------------------------------- param builder -------------------------------
def make_bottleneck_params(key, in_channels, out_channels, expansion=0.5):
    hidden = int(in_channels * expansion)
    ks = jax.random.split(key, 10)
    p = {}
    p["w1"] = 0.1 * jax.random.normal(ks[0], (hidden, in_channels, 1, 1), jnp.float32)
    p["bn1_gamma"] = 1.0 + 0.1 * jax.random.normal(ks[1], (hidden,), jnp.float32)
    p["bn1_beta"] = 0.1 * jax.random.normal(ks[2], (hidden,), jnp.float32)
    p["bn1_mean"] = 0.1 * jax.random.normal(ks[3], (hidden,), jnp.float32)
    p["bn1_var"] = 0.5 + jnp.abs(jax.random.normal(ks[4], (hidden,), jnp.float32)) * 0.5
    p["w2"] = 0.1 * jax.random.normal(ks[5], (out_channels, hidden, 3, 3), jnp.float32)
    p["bn2_gamma"] = 1.0 + 0.1 * jax.random.normal(ks[6], (out_channels,), jnp.float32)
    p["bn2_beta"] = 0.1 * jax.random.normal(ks[7], (out_channels,), jnp.float32)
    p["bn2_mean"] = 0.1 * jax.random.normal(ks[8], (out_channels,), jnp.float32)
    p["bn2_var"] = 0.5 + jnp.abs(jax.random.normal(ks[9], (out_channels,), jnp.float32)) * 0.5
    return p


# --------------------------- pure-JAX reference check -------------------------
def _reference(x_nchw, params, shortcut=True):
    def silu(v):
        return v * jax.nn.sigmoid(v)

    def bn(v, g, b, m, var):
        return (v - m[None, :, None, None]) / jnp.sqrt(var[None, :, None, None] + 1e-3) \
               * g[None, :, None, None] + b[None, :, None, None]

    y = jax.lax.conv_general_dilated(x_nchw, params["w1"], (1, 1), "SAME",
                                     dimension_numbers=("NCHW", "OIHW", "NCHW"))
    y = silu(bn(y, params["bn1_gamma"], params["bn1_beta"],
                params["bn1_mean"], params["bn1_var"]))
    y = jax.lax.conv_general_dilated(y, params["w2"], (1, 1), "SAME",
                                     dimension_numbers=("NCHW", "OIHW", "NCHW"))
    y = silu(bn(y, params["bn2_gamma"], params["bn2_beta"],
                params["bn2_mean"], params["bn2_var"]))
    if shortcut and x_nchw.shape[1] == params["w2"].shape[0]:
        y = y + x_nchw
    return y


if __name__ == "__main__":
    key = jax.random.PRNGKey(0)
    kx, kp = jax.random.split(key)

    N, Cin, H, W = 2, 8, 16, 16
    Cout = 8                      # in == out => shortcut add is active
    x = jax.random.normal(kx, (N, Cin, H, W), jnp.float32)
    params = make_bottleneck_params(kp, Cin, Cout, expansion=0.5)

    # bf16 matmul operands vs f32 XLA reference => loosened tolerances (per review).
    # shortcut path
    out = jax.block_until_ready(bottleneck_forward(x, params, shortcut=True))
    ref = jax.block_until_ready(_reference(x, params, shortcut=True))
    assert out.shape == (N, Cout, H, W)
    np.testing.assert_allclose(np.asarray(out), np.asarray(ref), rtol=5e-2, atol=5e-2)

    # no-shortcut path (same kernel, static use_add=False branch)
    out2 = jax.block_until_ready(bottleneck_forward(x, params, shortcut=False))
    ref2 = jax.block_until_ready(_reference(x, params, shortcut=False))
    np.testing.assert_allclose(np.asarray(out2), np.asarray(ref2), rtol=5e-2, atol=5e-2)

    print("KERNEL_OK")
</pallas_src>

<mosaic_0001>
module attributes {stable_mosaic.version = 11 : i64} {
  func.func @_bottleneck_kernel(%arg0: i32, %arg1: memref<8x256xbf16, #tpu.memory_space<vmem>>, %arg2: memref<16x8xbf16, #tpu.memory_space<vmem>>, %arg3: memref<16x1xf32, #tpu.memory_space<vmem>>, %arg4: memref<3x8x48xbf16, #tpu.memory_space<vmem>>, %arg5: memref<8x1xf32, #tpu.memory_space<vmem>>, %arg6: memref<8x256xf32, #tpu.memory_space<vmem>>) attributes {dimension_semantics = [#tpu.dimension_semantics<parallel>], iteration_bounds = array<i64: 2>, scalar_prefetch = 0 : i64, scratch_operands = 0 : i64, tpu.core_type = #tpu.core_type<tc>, window_params = [{transform_indices = @transform_0, window_bounds = array<i64: 8, 256>}, {pipeline_mode = #tpu.pipeline_mode<synchronous>, transform_indices = @transform_1, window_bounds = array<i64: 16, 8>}, {pipeline_mode = #tpu.pipeline_mode<synchronous>, transform_indices = @transform_2, window_bounds = array<i64: 16, 1>}, {pipeline_mode = #tpu.pipeline_mode<synchronous>, transform_indices = @transform_3, window_bounds = array<i64: 3, 8, 48>}, {pipeline_mode = #tpu.pipeline_mode<synchronous>, transform_indices = @transform_4, window_bounds = array<i64: 8, 1>}, {transform_indices = @transform_5, window_bounds = array<i64: 8, 256>}]} {
    %c0 = arith.constant 0 : index
    %c0_0 = arith.constant 0 : index
    %0 = vector.load %arg1[%c0, %c0_0] : memref<8x256xbf16, #tpu.memory_space<vmem>>, vector<8x256xbf16>
    %c0_1 = arith.constant 0 : index
    %c0_2 = arith.constant 0 : index
    %1 = vector.load %arg2[%c0_1, %c0_2] : memref<16x8xbf16, #tpu.memory_space<vmem>>, vector<16x8xbf16>
    %cst = arith.constant dense<0.000000e+00> : vector<16x256xf32>
    %2 = tpu.matmul %1, %0, %cst {dimension_numbers = #tpu.dot_dimension_numbers<[1], [0], [0], [1], [0, 0, 1, 1], [], []>} : vector<16x8xbf16>, vector<8x256xbf16>, vector<16x256xf32> -> vector<16x256xf32>
    %c0_3 = arith.constant 0 : index
    %c0_4 = arith.constant 0 : index
    %3 = vector.load %arg3[%c0_3, %c0_4] : memref<16x1xf32, #tpu.memory_space<vmem>>, vector<16x1xf32>
    %4 = vector.broadcast %3 : vector<16x1xf32> to vector<16x256xf32>
    %5 = arith.addf %2, %4 : vector<16x256xf32>
    %6 = arith.negf %5 : vector<16x256xf32>
    %7 = math.exp %6 : vector<16x256xf32>
    %cst_5 = arith.constant 1.000000e+00 : f32
    %8 = vector.broadcast %cst_5 : f32 to vector<16x256xf32>
    %9 = arith.addf %8, %7 : vector<16x256xf32>
    %10 = arith.divf %8, %9 : vector<16x256xf32>
    %11 = arith.mulf %5, %10 : vector<16x256xf32>
    %12 = tpu.iota {dimensions = array<i32: 1>} : vector<1x256xi32>
    %c256_i32 = arith.constant 256 : i32
    %c0_i32 = arith.constant 0 : i32
    %13 = arith.cmpi eq, %c256_i32, %c0_i32 : i32
    %c1_i32 = arith.constant 1 : i32
    %14 = arith.select %13, %c1_i32, %c256_i32 : i32
    %15 = vector.broadcast %14 : i32 to vector<1x256xi32>
    %16 = arith.remsi %12, %15 : vector<1x256xi32>
    %c0_i32_6 = arith.constant 0 : i32
    %17 = vector.broadcast %c0_i32_6 : i32 to vector<1x256xi32>
    %18 = arith.cmpi ne, %16, %17 : vector<1x256xi32>
    %c0_i32_7 = arith.constant 0 : i32
    %19 = vector.broadcast %c0_i32_7 : i32 to vector<1x256xi32>
    %20 = arith.cmpi slt, %16, %19 : vector<1x256xi32>
    %c0_i32_8 = arith.constant 0 : i32
    %21 = arith.cmpi slt, %14, %c0_i32_8 : i32
    %22 = vector.broadcast %21 : i1 to vector<1x256xi1>
    %23 = vector.broadcast %22 : vector<1x256xi1> to vector<1x256xi1>
    %24 = arith.xori %20, %23 : vector<1x256xi1>
    %25 = arith.andi %24, %18 : vector<1x256xi1>
    %26 = vector.broadcast %14 : i32 to vector<1x256xi32>
    %27 = arith.addi %16, %26 : vector<1x256xi32>
    %28 = arith.select %25, %27, %16 : vector<1x256xi1>, vector<1x256xi32>
    %c16_i32 = arith.constant 16 : i32
    %c0_i32_9 = arith.constant 0 : i32
    %29 = arith.cmpi eq, %c16_i32, %c0_i32_9 : i32
    %c1_i32_10 = arith.constant 1 : i32
    %30 = arith.select %29, %c1_i32_10, %c16_i32 : i32
    %31 = vector.broadcast %30 : i32 to vector<1x256xi32>
    %32 = arith.remsi %12, %31 : vector<1x256xi32>
    %c0_i32_11 = arith.constant 0 : i32
    %33 = vector.broadcast %c0_i32_11 : i32 to vector<1x256xi32>
    %34 = arith.cmpi ne, %32, %33 : vector<1x256xi32>
    %c0_i32_12 = arith.constant 0 : i32
    %35 = vector.broadcast %c0_i32_12 : i32 to vector<1x256xi32>
    %36 = arith.cmpi slt, %32, %35 : vector<1x256xi32>
    %c0_i32_13 = arith.constant 0 : i32
    %37 = arith.cmpi slt, %30, %c0_i32_13 : i32
    %38 = vector.broadcast %37 : i1 to vector<1x256xi1>
    %39 = vector.broadcast %38 : vector<1x256xi1> to vector<1x256xi1>
    %40 = arith.xori %36, %39 : vector<1x256xi1>
    %41 = arith.andi %40, %34 : vector<1x256xi1>
    %42 = vector.broadcast %30 : i32 to vector<1x256xi32>
    %43 = arith.addi %32, %42 : vector<1x256xi32>
    %44 = arith.select %41, %43, %32 : vector<1x256xi1>, vector<1x256xi32>
    %c16_i32_14 = arith.constant 16 : i32
    %45 = vector.broadcast %c16_i32_14 : i32 to vector<1x256xi32>
    %46 = arith.cmpi sge, %28, %45 : vector<1x256xi32>
    %c240_i32 = arith.constant 240 : i32
    %47 = vector.broadcast %c240_i32 : i32 to vector<1x256xi32>
    %48 = arith.cmpi slt, %28, %47 : vector<1x256xi32>
    %c0_i32_15 = arith.constant 0 : i32
    %49 = vector.broadcast %c0_i32_15 : i32 to vector<1x256xi32>
    %50 = arith.cmpi sgt, %44, %49 : vector<1x256xi32>
    %c15_i32 = arith.constant 15 : i32
    %51 = vector.broadcast %c15_i32 : i32 to vector<1x256xi32>
    %52 = arith.cmpi slt, %44, %51 : vector<1x256xi32>
    %c17_i32 = arith.constant 17 : i32
    %53 = tpu.dynamic_rotate %11 by %c17_i32 dim 1 : vector<16x256xf32>, i32 -> vector<16x256xf32>
    %54 = arith.andi %46, %50 : vector<1x256xi1>
    %cst_16 = arith.constant 0.000000e+00 : f32
    %55 = vector.shape_cast %54 : vector<1x256xi1> to vector<1x256xi1>
    %56 = vector.broadcast %55 : vector<1x256xi1> to vector<16x256xi1>
    %57 = vector.broadcast %cst_16 : f32 to vector<16x256xf32>
    %58 = arith.select %56, %53, %57 : vector<16x256xi1>, vector<16x256xf32>
    %c16_i32_17 = arith.constant 16 : i32
    %59 = tpu.dynamic_rotate %11 by %c16_i32_17 dim 1 : vector<16x256xf32>, i32 -> vector<16x256xf32>
    %cst_18 = arith.constant 0.000000e+00 : f32
    %60 = vector.shape_cast %46 : vector<1x256xi1> to vector<1x256xi1>
    %61 = vector.broadcast %60 : vector<1x256xi1> to vector<16x256xi1>
    %62 = vector.broadcast %cst_18 : f32 to vector<16x256xf32>
    %63 = arith.select %61, %59, %62 : vector<16x256xi1>, vector<16x256xf32>
    %c15_i32_19 = arith.constant 15 : i32
    %64 = tpu.dynamic_rotate %11 by %c15_i32_19 dim 1 : vector<16x256xf32>, i32 -> vector<16x256xf32>
    %65 = arith.andi %46, %52 : vector<1x256xi1>
    %cst_20 = arith.constant 0.000000e+00 : f32
    %66 = vector.shape_cast %65 : vector<1x256xi1> to vector<1x256xi1>
    %67 = vector.broadcast %66 : vector<1x256xi1> to vector<16x256xi1>
    %68 = vector.broadcast %cst_20 : f32 to vector<16x256xf32>
    %69 = arith.select %67, %64, %68 : vector<16x256xi1>, vector<16x256xf32>
    %70 = tpu.concatenate %58, %63, %69 in 0 : vector<16x256xf32>, vector<16x256xf32>, vector<16x256xf32> -> vector<48x256xf32>
    %71 = arith.truncf %70 : vector<48x256xf32> to vector<48x256xbf16>
    %c0_21 = arith.constant 0 : index
    %c0_22 = arith.constant 0 : index
    %c0_23 = arith.constant 0 : index
    %72 = vector.load %arg4[%c0_21, %c0_22, %c0_23] : memref<3x8x48xbf16, #tpu.memory_space<vmem>>, vector<1x8x48xbf16>
    %73 = vector.shape_cast %72 : vector<1x8x48xbf16> to vector<8x48xbf16>
    %cst_24 = arith.constant dense<0.000000e+00> : vector<8x256xf32>
    %74 = tpu.matmul %73, %71, %cst_24 {dimension_numbers = #tpu.dot_dimension_numbers<[1], [0], [0], [1], [0, 0, 1, 1], [], []>} : vector<8x48xbf16>, vector<48x256xbf16>, vector<8x256xf32> -> vector<8x256xf32>
    %c1_i32_25 = arith.constant 1 : i32
    %75 = tpu.dynamic_rotate %11 by %c1_i32_25 dim 1 : vector<16x256xf32>, i32 -> vector<16x256xf32>
    %cst_26 = arith.constant 0.000000e+00 : f32
    %76 = vector.shape_cast %50 : vector<1x256xi1> to vector<1x256xi1>
    %77 = vector.broadcast %76 : vector<1x256xi1> to vector<16x256xi1>
    %78 = vector.broadcast %cst_26 : f32 to vector<16x256xf32>
    %79 = arith.select %77, %75, %78 : vector<16x256xi1>, vector<16x256xf32>
    %c255_i32 = arith.constant 255 : i32
    %80 = tpu.dynamic_rotate %11 by %c255_i32 dim 1 : vector<16x256xf32>, i32 -> vector<16x256xf32>
    %cst_27 = arith.constant 0.000000e+00 : f32
    %81 = vector.shape_cast %52 : vector<1x256xi1> to vector<1x256xi1>
    %82 = vector.broadcast %81 : vector<1x256xi1> to vector<16x256xi1>
    %83 = vector.broadcast %cst_27 : f32 to vector<16x256xf32>
    %84 = arith.select %82, %80, %83 : vector<16x256xi1>, vector<16x256xf32>
    %85 = tpu.concatenate %79, %11, %84 in 0 : vector<16x256xf32>, vector<16x256xf32>, vector<16x256xf32> -> vector<48x256xf32>
    %86 = arith.truncf %85 : vector<48x256xf32> to vector<48x256xbf16>
    %c1 = arith.constant 1 : index
    %c0_28 = arith.constant 0 : index
    %c0_29 = arith.constant 0 : index
    %87 = vector.load %arg4[%c1, %c0_28, %c0_29] : memref<3x8x48xbf16, #tpu.memory_space<vmem>>, vector<1x8x48xbf16>
    %88 = vector.shape_cast %87 : vector<1x8x48xbf16> to vector<8x48xbf16>
    %cst_30 = arith.constant dense<0.000000e+00> : vector<8x256xf32>
    %89 = tpu.matmul %88, %86, %cst_30 {dimension_numbers = #tpu.dot_dimension_numbers<[1], [0], [0], [1], [0, 0, 1, 1], [], []>} : vector<8x48xbf16>, vector<48x256xbf16>, vector<8x256xf32> -> vector<8x256xf32>
    %90 = arith.addf %74, %89 : vector<8x256xf32>
    %c241_i32 = arith.constant 241 : i32
    %91 = tpu.dynamic_rotate %11 by %c241_i32 dim 1 : vector<16x256xf32>, i32 -> vector<16x256xf32>
    %92 = arith.andi %48, %50 : vector<1x256xi1>
    %cst_31 = arith.constant 0.000000e+00 : f32
    %93 = vector.shape_cast %92 : vector<1x256xi1> to vector<1x256xi1>
    %94 = vector.broadcast %93 : vector<1x256xi1> to vector<16x256xi1>
    %95 = vector.broadcast %cst_31 : f32 to vector<16x256xf32>
    %96 = arith.select %94, %91, %95 : vector<16x256xi1>, vector<16x256xf32>
    %c240_i32_32 = arith.constant 240 : i32
    %97 = tpu.dynamic_rotate %11 by %c240_i32_32 dim 1 : vector<16x256xf32>, i32 -> vector<16x256xf32>
    %cst_33 = arith.constant 0.000000e+00 : f32
    %98 = vector.shape_cast %48 : vector<1x256xi1> to vector<1x256xi1>
    %99 = vector.broadcast %98 : vector<1x256xi1> to vector<16x256xi1>
    %100 = vector.broadcast %cst_33 : f32 to vector<16x256xf32>
    %101 = arith.select %99, %97, %100 : vector<16x256xi1>, vector<16x256xf32>
    %c239_i32 = arith.constant 239 : i32
    %102 = tpu.dynamic_rotate %11 by %c239_i32 dim 1 : vector<16x256xf32>, i32 -> vector<16x256xf32>
    %103 = arith.andi %48, %52 : vector<1x256xi1>
    %cst_34 = arith.constant 0.000000e+00 : f32
    %104 = vector.shape_cast %103 : vector<1x256xi1> to vector<1x256xi1>
    %105 = vector.broadcast %104 : vector<1x256xi1> to vector<16x256xi1>
    %106 = vector.broadcast %cst_34 : f32 to vector<16x256xf32>
    %107 = arith.select %105, %102, %106 : vector<16x256xi1>, vector<16x256xf32>
    %108 = tpu.concatenate %96, %101, %107 in 0 : vector<16x256xf32>, vector<16x256xf32>, vector<16x256xf32> -> vector<48x256xf32>
    %109 = arith.truncf %108 : vector<48x256xf32> to vector<48x256xbf16>
    %c2 = arith.constant 2 : index
    %c0_35 = arith.constant 0 : index
    %c0_36 = arith.constant 0 : index
    %110 = vector.load %arg4[%c2, %c0_35, %c0_36] : memref<3x8x48xbf16, #tpu.memory_space<vmem>>, vector<1x8x48xbf16>
    %111 = vector.shape_cast %110 : vector<1x8x48xbf16> to vector<8x48xbf16>
    %cst_37 = arith.constant dense<0.000000e+00> : vector<8x256xf32>
    %112 = tpu.matmul %111, %109, %cst_37 {dimension_numbers = #tpu.dot_dimension_numbers<[1], [0], [0], [1], [0, 0, 1, 1], [], []>} : vector<8x48xbf16>, vector<48x256xbf16>, vector<8x256xf32> -> vector<8x256xf32>
    %113 = arith.addf %90, %112 : vector<8x256xf32>
    %c0_38 = arith.constant 0 : index
    %c0_39 = arith.constant 0 : index
    %114 = vector.load %arg5[%c0_38, %c0_39] : memref<8x1xf32, #tpu.memory_space<vmem>>, vector<8x1xf32>
    %115 = vector.broadcast %114 : vector<8x1xf32> to vector<8x256xf32>
    %116 = arith.addf %113, %115 : vector<8x256xf32>
    %117 = arith.negf %116 : vector<8x256xf32>
    %118 = math.exp %117 : vector<8x256xf32>
    %cst_40 = arith.constant 1.000000e+00 : f32
    %119 = vector.broadcast %cst_40 : f32 to vector<8x256xf32>
    %120 = arith.addf %119, %118 : vector<8x256xf32>
    %121 = arith.divf %119, %120 : vector<8x256xf32>
    %122 = arith.mulf %116, %121 : vector<8x256xf32>
    %123 = arith.extf %0 : vector<8x256xbf16> to vector<8x256xf32>
    %124 = arith.addf %122, %123 : vector<8x256xf32>
    %c0_41 = arith.constant 0 : index
    %c0_42 = arith.constant 0 : index
    %125 = vector.load %arg6[%c0_41, %c0_42] : memref<8x256xf32, #tpu.memory_space<vmem>>, vector<8x256xf32>
    tpu.vector_store %arg6[%c0_41, %c0_42], %124 {strides = array<i32>} : memref<8x256xf32, #tpu.memory_space<vmem>>, vector<8x256xf32>,
    return
  }
  func.func @transform_0(%arg0: i32) -> (i32, i32) {
    %c0_i32 = arith.constant 0 : i32
    %c0_i32_0 = arith.constant 0 : i32
    return %c0_i32, %arg0 : i32, i32
  }
  func.func @transform_1(%arg0: i32) -> (i32, i32) {
    %c0_i32 = arith.constant 0 : i32
    %c0_i32_0 = arith.constant 0 : i32
    %c0_i32_1 = arith.constant 0 : i32
    return %c0_i32, %c0_i32_0 : i32, i32
  }
  func.func @transform_2(%arg0: i32) -> (i32, i32) {
    %c0_i32 = arith.constant 0 : i32
    %c0_i32_0 = arith.constant 0 : i32
    %c0_i32_1 = arith.constant 0 : i32
    return %c0_i32, %c0_i32_0 : i32, i32
  }
  func.func @transform_3(%arg0: i32) -> (i32, i32, i32) {
    %c0_i32 = arith.constant 0 : i32
    %c0_i32_0 = arith.constant 0 : i32
    %c0_i32_1 = arith.constant 0 : i32
    %c0_i32_2 = arith.constant 0 : i32
    return %c0_i32, %c0_i32_0, %c0_i32_1 : i32, i32, i32
  }
  func.func @transform_4(%arg0: i32) -> (i32, i32) {
    %c0_i32 = arith.constant 0 : i32
    %c0_i32_0 = arith.constant 0 : i32
    %c0_i32_1 = arith.constant 0 : i32
    return %c0_i32, %c0_i32_0 : i32, i32
  }
  func.func @transform_5(%arg0: i32) -> (i32, i32) {
    %c0_i32 = arith.constant 0 : i32
    %c0_i32_0 = arith.constant 0 : i32
    return %c0_i32, %arg0 : i32, i32
  }
}

</mosaic_0001>

<bundles_post_ra>
// kernel: tpu_custom_call.1
= control target key start
LH: loop header
LB: loop body
LE: loop exit
PB: predicated region body
PF: predicated region fallthrough
CT: control target
= control target key end

     0   :  { %10 = vsyncpa [#allocation3], 0  ;;  %s1477_s0 = inlined_call_operand.vmem [shape: bf16[8,512], index: 0, kind: input, shape index: {}]   ;;  %s1478_s1 = inlined_call_operand.vmem [shape: bf16[16,8], index: 1, kind: input, shape index: {}]   ;;  %s1479_s2 = inlined_call_operand.vmem [shape: f32[16,1], index: 2, kind: input, shape index: {}]   ;;  %s1480_s3 = inlined_call_operand.vmem [shape: bf16[3,8,48], index: 3, kind: input, shape index: {}]   ;;  %s1481_s4 = inlined_call_operand.vmem [shape: f32[8,1], index: 4, kind: input, shape index: {}]   ;;  %s1482_s5 = inlined_call_operand.hbm [shape: f32[8,512], index: 5, kind: output, shape index: {}]  }
   0x1   :  { %12 = vsyncpa [#allocation3 + $0x1], 0  ;;  %s1160_s18 = smov 0   ;;  %s1162_s19 = smov 0  }
   0x2   :  { %s1164_s20 = smov 0   ;;  %s1166_s21 = smov 0  }
   0x3 LB: > { %s1181_s22 = sadd.s32 4294967295, %s1118_s21   ;;  %s829_s23 = sadd.s32 4294967294, %s1118_s21   ;;  %s1118_s21 = sphi %s1166_s21, %s1502_s21   ;;  %s1114_s20 = sphi %s1164_s20, %s1501_s20   ;;  %s1110_s19 = sphi %s1162_s19, %s1500_s19   ;;  %s1106_s18 = sphi %s1160_s18, %s1499_s18  }
   0x4   : > { %s1185_s24 = sadd.s32 1, %s1118_s21   ;;  %s135_s25 = sadd.s32 1, %s1114_s20 }
   0x5   : > { %s132_s26 = ssub.s32 %s1118_s21, %s1185_s24  ;;  %p145_p0 = scmp.ne.s32.totalorder %s1114_s20, %s1110_s19 }
   0x6   : > { %p133_p1 = scmp.eq.s32.totalorder %s132_s26, 0  ;;  %p146_p2 = scmp.eq.s32.totalorder %s1181_s22, 1 }
   0x7   : > { %p151_p3 = scmp.ne.s32.totalorder %s1110_s19, %s1106_s18  ;;  %p152_p4 = scmp.eq.s32.totalorder %s829_s23, 1 }
   0x8   : > { %s1196_s27 = scalar_select %p133_p1, %s1114_s20, %s135_s25  }
   0x9   : > { %p1198_p5 = por %p146_p2, %p145_p0  ;;  %p1202_p6 = por %p152_p4, %p151_p3 }
   0xa   : > { %p832_p7 = scmp.ge.s32.totalorder %s1118_s21, 1  ;;  %p191_p8 = scmp.lt.s32.totalorder %s1118_s21, 3 }
   0xc   : > { %p192_p9 = pnand %p832_p7, %p191_p8 }
   0xd   : > { %s834_s30 = sshll.u32 (!%p192_p9), %s1181_s22, 1  ;;  %v1120_v0 = vmov (!%p192_p9), 0   ;;  %v230_v1 = vld [vmem:[%s1479_s2] sm:$0xff] (!%p192_p9)  ;;  %v231_v2 = vld [vmem:[%s1479_s2 + $0x8] sm:$0xff] (!%p192_p9)  ;;  %vm256_vm0 = vcmask (!%p192_p9), 1043456   ;;  %vm252_vm1 = vcmask (!%p192_p9), 64512   ;;  %v334_v43 = vlaneseq (!%p192_p9) }
   0xe   : > { %195 = sbr.rel (%p192_p9) target bundleno = 694 (0x2b6), region = 40  ;;  %p220_p10 = scmp.lt.s32.totalorder (!%p192_p9), %s834_s30, 3  ;;  %295 = vmatprep.mubr.bf16.mxu0 (!%p192_p9), %v1120_v0  ;;  %948 = vset.pattern.permute.xlu0 (!%p192_p9), %v1120_v0  ;;  %v1031_v7 = vld [vmem:[%s1478_s1] sm:$0xff] (!%p192_p9)  }
   0xf   : > { %234 = vperm.xlu0 (!%p192_p9), %948, %v230_v1   ;;  %553 = vmatprep.mubr.bf16.mxu1 (!%p192_p9), %v1120_v0  ;;  %s1121_s16 = smov (!%p192_p9), 127   ;;  %s1122_s17 = smov (!%p192_p9), 1   ;;  %v727_v42 = vld [vmem:[%s1481_s4] sm:$0xff] (!%p192_p9)  ;;  %v1250_v44 = vand.u32 (!%p192_p9), 127, %v334_v43 }
  0x10   : > { %s1123_s23 = smov (!%p192_p9), 17   ;;  %s1124_s25 = smov (!%p192_p9), 113   ;;  %v845_v43 = vld [vmem:[%s1480_s3 + $0x4] sm:$0xf] (!%p192_p9) }
  0x11   : > { %s1125_s26 = smov (!%p192_p9), 16   ;;  %s1127_s6 = smov (!%p192_p9), 15   ;;  %v336_v45 = vadd.s32 (!%p192_p9), 128, %v1250_v44  ;;  %v365_v49 = vand.u32 (!%p192_p9), 15, %v1250_v44  ;;  %vm475_vm3 = vcmp.lt.s32.totalorder (!%p192_p9), %v1250_v44, 1  ;;  %v341_v58 = vand.u32 (!%p192_p9), 255, %v1250_v44 }
  0x12   : > { %s1128_s7 = smov (!%p192_p9), 111   ;;  %vm496_vm6 = vcmp.lt.s32.totalorder (!%p192_p9), %v1250_v44, 127  ;;  %vm401_vm11 = vcmp.lt.s32.totalorder (!%p192_p9), %v1250_v44, 17 }
  0x13   : > { %239 = vperm.xlu0 (!%p192_p9), %948, %v231_v2   ;;  %v372_v48 = vand.u32 (!%p192_p9), 15, %v336_v45  ;;  %vm1259_vm4 = vcmp.gt.s32.totalorder (!%p192_p9), %v365_v49, 0  ;;  %v348_v2 = vand.u32 (!%p192_p9), 255, %v336_v45  ;;  %vm1284_vm9 = vcmp.ge.s32.totalorder (!%p192_p9), %v341_v58, 16 }
  0x14   : > { %vm849_vm7 = vmpackc.low (!%p192_p9), %vm1259_vm4, %vm1259_vm4  ;;  %vm1301_vm12 = vcmp.lt.s32.totalorder (!%p192_p9), %v365_v49, 15 }
  0x15   : > { %s1504_s30 = smov (!%p220_p10, %s834_s30), 3  ;;  %vm1254_vm2 = vcmp.gt.s32.totalorder %v372_v48, 0  ;;  %vm1276_vm8 = vcmp.lt.s32.totalorder %v372_v48, 15  ;;  %vm1293_vm10 = vcmp.lt.s32.totalorder %v348_v2, 240  ;;  %vm406_vm14 = vmand %vm1284_vm9, %vm1259_vm4 }
  0x16   : > { %s835_s10 = sshll.u32 %s1504_s30, 2  ;;  %s1126_s30 = smov 112   ;;  %vm846_vm5 = vmpackc.low %vm1254_vm2, %vm1254_vm2 }
  0x17   : > { %s223_s13 = scalar_lea.vmem %s1477_s0, %s835_s10  ;;  %vm852_vm13 = vmpackc.low %vm1276_vm8, %vm1276_vm8 }
  0x18   : > { %v1221_v3 = vld [vmem:[%s223_s13] sm:$0xff]  ;;  %vm620_vm15 = vmand %vm1293_vm10, %vm1254_vm2  ;;  %vm424_vm2 = vcmp.lt.s32.totalorder %v1250_v44, 16 }
  0x19   : > { %v838_v4 = vcombine.high %v1221_v3, %v1221_v3  ;;  %v837_v5 = vcombine.low %v1221_v3, %v1221_v3  ;;  %vm882_vm4 = vmpackc.low %vm1293_vm10, %vm1293_vm10 }
  0x1b   : > { %839 = vmatprep.subr.msk.bf16.mxu0 %vm256_vm0, %v838_v4  ;;  %v258_v6 = vsel %vm256_vm0, %v837_v5, 0  ;;  %vm614_vm0 = vcmp.lt.s32.totalorder %v1250_v44, 113 }
  0x1c   : > { %264 = vmatpush1.bf16.msra.mxu0 %v258_v6 }
  0x1f   : > { %840 = vmatmul.mubr.msk.bf16.vlgmr.msra.gmra.mrb[0].mxu0 %vm252_vm1, %v1031_v7  ;;  %vm855_vm1 = vmpackc.low %vm1301_vm12, %vm1301_vm12 }
  0x20   : > { %597 = vmatprep.mubr.bf16.mxu0 %v1120_v0 }
  0x8e   : > { %v235_v8 = vpop.permute.xlu0 %234 }
  0x92   : > { %v240_v12 = vpop.permute.xlu0 %239 }
  0xf2   : > { %v297_v9 = vpop.f32.mrb[0].mxu0 }
  0xf3   : > { %v298_v10 = vadd.f32 %v297_v9, %v235_v8  ;;  %v299_v11 = vpop.f32.mrb[1].mxu0 }
  0xf4   : > { %v300_v13 = vadd.f32 %v299_v11, %v235_v8  ;;  %v301_v14 = vpop.f32.mrb[2].mxu0 }
  0xf5   : > { %v841_v15 = vmul.f32 -1.442695, %v298_v10  ;;  %v302_v16 = vadd.f32 %v301_v14, %v240_v12  ;;  %v303_v17 = vpop.f32.mrb[3].mxu0  ;;  %v466_v14 = vld [vmem:[%s1480_s3] sm:$0xf] }
  0xf6   : > { %v842_v18 = vmul.f32 -1.442695, %v300_v13  ;;  %v304_v19 = vadd.f32 %v303_v17, %v240_v12 }
  0xf7   : > { %1032 = vpow2.f32 %v841_v15  ;;  %v843_v20 = vmul.f32 -1.442695, %v302_v16 }
  0xf8   : > { %1034 = vpow2.f32 %v842_v18  ;;  %v844_v21 = vmul.f32 -1.442695, %v304_v19 }
  0xf9   : > { %1036 = vpow2.f32 %v843_v20 }
  0xfa   : > { %1038 = vpow2.f32 %v844_v21 }
 0x101   : > { %v1033_v22 = vpop.eup %1032 }
 0x102   : > { %v1035_v23 = vpop.eup %1034  ;;  %v318_v24 = vadd.f32 1.0, %v1033_v22 }
 0x103   : > { %v1037_v25 = vpop.eup %1036  ;;  %v319_v26 = vadd.f32 1.0, %v1035_v23 }
 0x104   : > { %v1039_v27 = vpop.eup %1038  ;;  %1040 = vrcp.f32 %v318_v24  ;;  %v320_v28 = vadd.f32 1.0, %v1037_v25 }
 0x105   : > { %1042 = vrcp.f32 %v319_v26  ;;  %v321_v29 = vadd.f32 1.0, %v1039_v27 }
 0x106   : > { %1044 = vrcp.f32 %v320_v28 }
 0x107   : > { %1046 = vrcp.f32 %v321_v29 }
 0x10e   : > { %v1041_v30 = vpop.eup %1040 }
 0x10f   : > { %v1043_v31 = vpop.eup %1042  ;;  %v1231_v34 = vmul.f32 %v1041_v30, %v298_v10  ;;  %v875_v10 = vld [vmem:[%s1480_s3 + $0x8] sm:$0xf] }
 0x110   : > { %v1045_v32 = vpop.eup %1044  ;;  %v1235_v36 = vmul.f32 %v1043_v31, %v300_v13 }
 0x111   : > { %v1047_v33 = vpop.eup %1046  ;;  %v1233_v35 = vmul.f32 %v1045_v32, %v302_v16 }
 0x112   : > { %v1237_v37 = vmul.f32 %v1047_v33, %v304_v19 }
 0x113   : > { %v954_v38 = vpack.i.bf16 %v1233_v35, %v1231_v34  ;;  %v511_v41 = vpack.c.bf16 %v1233_v35, %v1231_v34 }
 0x114   : > { %v989_v39 = vpack.i.bf16 %v1237_v37, %v1235_v36  ;;  %v512_v40 = vpack.c.bf16 %v1237_v37, %v1235_v36 }
 0x115   : > { %955 = vrot.lane.b32.xlu0 %v954_v38, %s1121_s16  ;;  %950 = vrot.lane.b32.xlu1 %v954_v38, %s1122_s17 }
 0x119   : > { %960 = vrot.lane.b32.xlu0 %v954_v38, %s1123_s23  ;;  %990 = vrot.lane.b32.xlu1 %v989_v39, %s1122_s17 }
 0x11d   : > { %965 = vrot.lane.b32.xlu0 %v954_v38, %s1124_s25  ;;  %995 = vrot.lane.b32.xlu1 %v989_v39, %s1121_s16  ;;  %s216_s16 = sand.u32 1, %s1110_s19  }
 0x11e   : > { %s833_s17 = sshll.u32 %s216_s16, 4  ;;  %s756_s8 = scalar_lea.sflag [#allocation3], %s216_s16 }
 0x121   : > { %970 = vrot.lane.b32.xlu0 %v954_v38, %s1125_s26  ;;  %1000 = vrot.lane.b32.xlu1 %v989_v39, %s1123_s23  ;;  %s899_s23 = sshll.u32 %s1181_s22, 8  ;;  %s1129_s22 = smov [#allocation2]  }
 0x122   : > { %s1060_s10 = sshll.u32 %s1129_s22, 4  ;;  %s1061_s10 = int_to_ptr.vmem [resolvable:$false] %s1060_s10 }
 0x123   : > { %s1062_s11 = scalar_lea.vmem %s1061_s10, 512 }
 0x125   : > { %975 = vrot.lane.b32.xlu0 %v954_v38, %s1126_s30  ;;  %1005 = vrot.lane.b32.xlu1 %v989_v39, %s1124_s25  ;;  %s218_s25 = scalar_lea.vmem [#allocation2], %s833_s17 }
 0x129   : > { %980 = vrot.lane.b32.xlu0 %v954_v38, %s1127_s6  ;;  %1010 = vrot.lane.b32.xlu1 %v989_v39, %s1125_s26  ;;  %s770_s26 = sshll.u32 %s218_s25, 4  ;;  %s1437_s26 = int_to_ptr.vmem [resolvable:$true] %s770_s26 }
 0x12a   : > { %s1056_s9 = scalar_lea.vmem %s1437_s26, 256  ;;  %p1063_p0 = scmp.lt.s32.totalorder %s1437_s26, %s1061_s10 }
 0x12b   : > { %p1057_p11 = scmp.ne.s32.totalorder %s1437_s26, %s1056_s9  ;;  %p1064_p1 = scmp.lt.s32.totalorder %s1062_s11, %s1056_s9 }
 0x12d   : > { %985 = vrot.lane.b32.xlu0 %v954_v38, %s1128_s7  ;;  %1015 = vrot.lane.b32.xlu1 %v989_v39, %s1126_s30  ;;  %p1058_p12 = pnand %p1057_p11, %p1198_p5  ;;  %p1065_p2 = por %p1064_p1, %p1063_p0 }
 0x12f   : > { %p1059_p13 = pneg %p1058_p12 }
 0x131   : > { %730 = vperm.xlu0 %948, %v727_v42   ;;  %1020 = vrot.lane.b32.xlu1 %v989_v39, %s1127_s6  ;;  %p1066_p3 = pnand %p1065_p2, %p1059_p13 }
 0x135   : > { %1025 = vrot.lane.b32.xlu1 %v989_v39, %s1128_s7  ;;  %s1435_s7 = scalar_lea.hbm %s1482_s5, %s899_s23 }
 0x187   : > { %v956_v46 = vpop.permute.xlu0 %955  ;;  %v951_v47 = vpop.permute.xlu1 %950 }
 0x188   : > { %v953_v54 = vunpack.i.h.bf16 %v951_v47  ;;  %v952_v55 = vunpack.i.l.bf16 %v951_v47  ;;  %v958_v6 = vunpack.i.h.bf16 %v956_v46  ;;  %v957_v7 = vunpack.i.l.bf16 %v956_v46 }
 0x18b   : > { %v961_v50 = vpop.permute.xlu0 %960  ;;  %v991_v51 = vpop.permute.xlu1 %990 }
 0x18c   : > { %v993_v56 = vunpack.i.h.bf16 %v991_v51  ;;  %v992_v57 = vunpack.i.l.bf16 %v991_v51  ;;  %v963_v18 = vunpack.i.h.bf16 %v961_v50  ;;  %v962_v19 = vunpack.i.l.bf16 %v961_v50 }
 0x18e   : > { %v476_v59 = vsel %vm475_vm3, %v952_v55, %v992_v57  ;;  %v477_v60 = vsel %vm475_vm3, %v953_v54, %v993_v56  ;;  %v478_v61 = vsel %vm475_vm3, %v992_v57, %v952_v55  ;;  %v479_v62 = vsel %vm475_vm3, %v993_v56, %v953_v54  ;;  %vm862_vm3 = vmpackc.low %vm406_vm14, %vm406_vm14 }
 0x18f   : > { %v966_v63 = vpop.permute.xlu0 %965  ;;  %v996_v1 = vpop.permute.xlu1 %995  ;;  %v847_v4 = vpack.c.bf16 %v477_v60, %v476_v59  ;;  %v850_v5 = vpack.c.bf16 %v479_v62, %v478_v61  ;;  %vm865_vm14 = vmpackc.low %vm1284_vm9, %vm1284_vm9 }
 0x190   : > { %v998_v8 = vunpack.i.h.bf16 %v996_v1  ;;  %v997_v9 = vunpack.i.l.bf16 %v996_v1  ;;  %v968_v29 = vunpack.i.h.bf16 %v966_v63  ;;  %v967_v33 = vunpack.i.l.bf16 %v966_v63 }
 0x191   : > { %848 = vmatprep.subr.msk.bf16.mxu1 %vm846_vm5, %v847_v4 }
 0x192   : > { %v500_v11 = vsel %vm496_vm6, %v998_v8, %v958_v6  ;;  %v499_v12 = vsel %vm496_vm6, %v997_v9, %v957_v7  ;;  %851 = vmatpush1.bf16.msk.msra.mxu1 %vm849_vm7, %v850_v5  ;;  %v498_v22 = vsel %vm496_vm6, %v958_v6, %v998_v8  ;;  %v497_v23 = vsel %vm496_vm6, %v957_v7, %v997_v9 }
 0x193   : > { %v971_v15 = vpop.permute.xlu0 %970  ;;  %v1001_v16 = vpop.permute.xlu1 %1000  ;;  %523 = vmatprep.subr.bf16.mxu1 %v512_v40  ;;  %v853_v24 = vpack.c.bf16 %v500_v11, %v499_v12  ;;  %v856_v36 = vpack.c.bf16 %v498_v22, %v497_v23  ;;  %vm517_vm6 = vcmask 392192  }
 0x194   : > { %v1003_v20 = vunpack.i.h.bf16 %v1001_v16  ;;  %v1002_v21 = vunpack.i.l.bf16 %v1001_v16  ;;  %v973_v48 = vunpack.i.h.bf16 %v971_v15  ;;  %v972_v49 = vunpack.i.l.bf16 %v971_v15 }
 0x196   : > { %v403_v25 = vsel %vm401_vm11, %v963_v18, %v1003_v20  ;;  %v405_v26 = vsel %vm401_vm11, %v1003_v20, %v963_v18  ;;  %v402_v27 = vsel %vm401_vm11, %v962_v19, %v1002_v21  ;;  %v404_v28 = vsel %vm401_vm11, %v1002_v21, %v962_v19  ;;  %524 = vmatpush1.bf16.msra.mxu1 %v511_v41  ;;  %vm1357_vm11 = vmpackc.low %vm620_vm15, %vm620_vm15 }
 0x197   : > { %v860_v30 = vpack.c.bf16 %v403_v25, %v402_v27  ;;  %v863_v31 = vpack.c.bf16 %v405_v26, %v404_v28  ;;  %v1006_v32 = vpop.permute.xlu1 %1005  ;;  %854 = vmatprep.subr.msk.bf16.mxu1 %vm852_vm13, %v853_v24  ;;  %v976_v37 = vpop.permute.xlu0 %975  ;;  %vm445_vm15 = vcmp.lt.s32.totalorder %v1250_v44, 15 }
 0x198   : > { %v1008_v34 = vunpack.i.h.bf16 %v1006_v32  ;;  %v1007_v35 = vunpack.i.l.bf16 %v1006_v32  ;;  %v978_v61 = vunpack.i.h.bf16 %v976_v37  ;;  %v977_v62 = vunpack.i.l.bf16 %v976_v37 }
 0x199   : > { %861 = vmatprep.subr.msk.bf16.mxu0 %vm846_vm5, %v860_v30  ;;  %vm637_vm5 = vcmp.lt.s32.totalorder %v1250_v44, 112 }
 0x19a   : > { %v616_v39 = vsel %vm614_vm0, %v968_v29, %v1008_v34  ;;  %v618_v40 = vsel %vm614_vm0, %v1008_v34, %v968_v29  ;;  %v615_v41 = vsel %vm614_vm0, %v967_v33, %v1007_v35  ;;  %v617_v42 = vsel %vm614_vm0, %v1007_v35, %v967_v33  ;;  %857 = vmatpush1.bf16.msk.msra.mxu1 %vm855_vm1, %v856_v36 }
 0x19b   : > { %v877_v45 = vpack.c.bf16 %v618_v40, %v617_v42  ;;  %v880_v46 = vpack.c.bf16 %v616_v39, %v615_v41  ;;  %864 = vmatpush1.bf16.msk.msra.mxu0 %vm862_vm3, %v863_v31  ;;  %v1011_v47 = vpop.permute.xlu1 %1010  ;;  %v981_v57 = vpop.permute.xlu0 %980  ;;  %vm658_vm3 = vcmp.lt.s32.totalorder %v1250_v44, 111 }
 0x19c   : > { %v1013_v50 = vunpack.i.h.bf16 %v1011_v47  ;;  %v1012_v51 = vunpack.i.l.bf16 %v1011_v47  ;;  %v983_v8 = vunpack.i.h.bf16 %v981_v57  ;;  %v982_v9 = vunpack.i.l.bf16 %v981_v57 }
 0x19d   : > { %878 = vmatprep.subr.msk.bf16.mxu1 %vm1357_vm11, %v877_v45  ;;  %858 = vmatmul.mubr.msk.bf16.vlgmr.msra.gmra.mrb[0].mxu1 %vm517_vm6, %v845_v43  ;;  %vm664_vm11 = vmand %vm1293_vm10, %vm1276_vm8 }
 0x19e   : > { %v428_v52 = vsel %vm424_vm2, %v1013_v50, %v973_v48  ;;  %v427_v54 = vsel %vm424_vm2, %v1012_v51, %v972_v49  ;;  %881 = vmatpush1.bf16.msk.msra.mxu1 %vm849_vm7, %v880_v46  ;;  %v425_v55 = vsel %vm424_vm2, %v972_v49, %v1012_v51  ;;  %v426_v56 = vsel %vm424_vm2, %v973_v48, %v1013_v50  ;;  %vm450_vm7 = vmand %vm1284_vm9, %vm1301_vm12 }
 0x19f   : > { %v866_v58 = vpack.c.bf16 %v428_v52, %v427_v54  ;;  %v1016_v59 = vpop.permute.xlu1 %1015  ;;  %v463_v60 = vpack.c.bf16 %v426_v56, %v425_v55  ;;  %716 = vmatprep.mubr.bf16.mxu1 %v1120_v0  ;;  %v986_v15 = vpop.permute.xlu0 %985  ;;  %vm871_vm0 = vmpackc.low %vm450_vm7, %vm450_vm7 }
 0x1a0   : > { %v1018_v63 = vunpack.i.h.bf16 %v1016_v59  ;;  %v1017_v53 = vunpack.i.l.bf16 %v1016_v59  ;;  %v988_v24 = vunpack.i.h.bf16 %v986_v15  ;;  %v987_v25 = vunpack.i.l.bf16 %v986_v15  ;;  %vm885_vm9 = vmpackc.low %vm664_vm11, %vm664_vm11 }
 0x1a1   : > { %567 = vmatprep.subr.bf16.mxu0 %v463_v60  ;;  %v750_v60 = vunpack.c.h.bf16 %v1221_v3 }
 0x1a2   : > { %v639_v1 = vsel %vm637_vm5, %v978_v61, %v1018_v63  ;;  %v641_v2 = vsel %vm637_vm5, %v1018_v63, %v978_v61  ;;  %v638_v4 = vsel %vm637_vm5, %v977_v62, %v1017_v53  ;;  %v640_v5 = vsel %vm637_vm5, %v1017_v53, %v977_v62  ;;  %867 = vmatpush1.bf16.msk.msra.mxu0 %vm865_vm14, %v866_v58 }
 0x1a3   : > { %v675_v0 = vpack.c.bf16 %v639_v1, %v638_v4  ;;  %v883_v6 = vpack.c.bf16 %v641_v2, %v640_v5  ;;  %v1021_v7 = vpop.permute.xlu1 %1020  ;;  %v749_v58 = vunpack.c.l.bf16 %v1221_v3 }
 0x1a4   : > { %v1023_v11 = vunpack.i.h.bf16 %v1021_v7  ;;  %v1022_v12 = vunpack.i.l.bf16 %v1021_v7 }
 0x1a5   : > { %884 = vmatprep.subr.msk.bf16.mxu1 %vm882_vm4, %v883_v6 }
 0x1a6   : > { %v447_v16 = vsel %vm445_vm15, %v983_v8, %v1023_v11  ;;  %v449_v18 = vsel %vm445_vm15, %v1023_v11, %v983_v8  ;;  %v446_v19 = vsel %vm445_vm15, %v982_v9, %v1022_v12  ;;  %v448_v20 = vsel %vm445_vm15, %v1022_v12, %v982_v9  ;;  %687 = vmatpush1.bf16.msra.mxu1 %v675_v0 }
 0x1a7   : > { %v869_v21 = vpack.c.bf16 %v447_v16, %v446_v19  ;;  %v872_v22 = vpack.c.bf16 %v449_v18, %v448_v20  ;;  %v1026_v23 = vpop.permute.xlu1 %1025 }
 0x1a8   : > { %v1028_v26 = vunpack.i.h.bf16 %v1026_v23  ;;  %v1027_v27 = vunpack.i.l.bf16 %v1026_v23 }
 0x1a9   : > { %870 = vmatprep.subr.msk.bf16.mxu0 %vm852_vm13, %v869_v21 }
 0x1aa   : > { %v660_v13 = vsel %vm658_vm3, %v988_v24, %v1028_v26  ;;  %v662_v28 = vsel %vm658_vm3, %v1028_v26, %v988_v24  ;;  %v659_v29 = vsel %vm658_vm3, %v987_v25, %v1027_v27  ;;  %v661_v44 = vsel %vm658_vm3, %v1027_v27, %v987_v25  ;;  %873 = vmatpush1.bf16.msk.msra.mxu0 %vm871_vm0, %v872_v22 }
 0x1ab   : > { %v886_v30 = vpack.c.bf16 %v662_v28, %v661_v44  ;;  %v889_v31 = vpack.c.bf16 %v660_v13, %v659_v29 }
 0x1ad   : > { %874 = vmatmul.mubr.msk.bf16.vlgmr.msra.gmra.mrb[4].mxu0 %vm517_vm6, %v466_v14  ;;  %887 = vmatprep.subr.msk.bf16.mxu1 %vm885_vm9, %v886_v30 }
 0x1ae   : > { %890 = vmatpush1.bf16.msk.msra.mxu1 %vm855_vm1, %v889_v31 }
 0x1b0   : > { %v731_v45 = vpop.permute.xlu0 %730 }
 0x1b1   : > { %891 = vmatmul.mubr.msk.bf16.vlgmr.msra.gmra.mrb[4].mxu1 %vm517_vm6, %v875_v10 }
 0x270   : > { %v555_v32 = vpop.f32.mrb[0].mxu1 }
 0x271   : > { %v557_v33 = vpop.f32.mrb[1].mxu1 }
 0x272   : > { %v559_v36 = vpop.f32.mrb[2].mxu1 }
 0x273   : > { %v560_v34 = vpop.f32.mrb[3].mxu1 }
 0x280   : > { %v599_v35 = vpop.f32.mrb[4].mxu0 }
 0x281   : > { %v600_v37 = vadd.f32 %v599_v35, %v555_v32  ;;  %v601_v38 = vpop.f32.mrb[5].mxu0 }
 0x282   : > { %v602_v39 = vadd.f32 %v601_v38, %v557_v33  ;;  %v603_v40 = vpop.f32.mrb[6].mxu0 }
 0x283   : > { %v604_v41 = vpop.f32.mrb[7].mxu0 }
 0x284   : > { %v718_v42 = vpop.f32.mrb[4].mxu1 }
 0x285   : > { %v725_v17 = vadd.f32 %v718_v42, %v600_v37  ;;  %v720_v43 = vpop.f32.mrb[5].mxu1 }
 0x286   : > { %v726_v46 = vadd.f32 %v720_v43, %v602_v39  ;;  %v722_v47 = vpop.f32.mrb[6].mxu1 }
 0x287   : > { %v733_v48 = vadd.f32 %v731_v45, %v725_v17  ;;  %v723_v49 = vpop.f32.mrb[7].mxu1 }
 0x288   : > { %v734_v50 = vadd.f32 %v731_v45, %v726_v46 }
 0x289   : > { %v892_v51 = vmul.f32 -1.442695, %v733_v48 }
 0x28a   : > { %v893_v52 = vmul.f32 -1.442695, %v734_v50 }
 0x28b   : > { %1048 = vpow2.f32 %v892_v51 }
 0x28c   : > { %1050 = vpow2.f32 %v893_v52 }
 0x295   : > { %v1049_v54 = vpop.eup %1048 }
 0x296   : > { %v1051_v55 = vpop.eup %1050  ;;  %v741_v56 = vadd.f32 1.0, %v1049_v54 }
 0x297   : > { %v742_v57 = vadd.f32 1.0, %v1051_v55 }
 0x298   : > { %1052 = vrcp.f32 %v741_v56 }
 0x299   : > { %1054 = vrcp.f32 %v742_v57 }
 0x2a2   : > { %v1053_v59 = vpop.eup %1052 }
 0x2a3   : > { %v1055_v61 = vpop.eup %1054  ;;  %v747_v62 = vmul.f32 %v1053_v59, %v733_v48 }
 0x2a4   : > { %v748_v63 = vmul.f32 %v1055_v61, %v734_v50 }
 0x2a5   : > { %v751_v53 = vadd.f32 %v749_v58, %v747_v62 }
 0x2a6   : > { %v752_v1 = vadd.f32 %v750_v60, %v748_v63 }
 0x2a7   : > { %753 = vst [vmem:[%s218_s25] sm:$0xff] %v751_v53 }
 0x2a8   : > { %754 = vst [vmem:[%s218_s25 + $0x8] sm:$0xff] %v752_v1 }
 0x2a9   : > { %1069 = shalt.err (!%p1066_p3)
}
 0x2aa   : > { %s1070_s12 = scalar_lea.hbm %s1435_s7, 256  ;;  %s1074_s15 = scalar_lea.hbm %s1482_s5, 512 }
 0x2ab   : > { %p1071_p4 = scmp.ne.s32.totalorder %s1435_s7, %s1070_s12  ;;  %p1075_p9 = scmp.lt.u32.totalorder %s1435_s7, %s1482_s5 }
 0x2ac   : > { %p1076_p10 = scmp.lt.u32.totalorder %s1074_s15, %s1070_s12  ;;  %p1078_p12 = scmp.lt.u32.totalorder %s1070_s12, %s1435_s7 }
 0x2ad   : > { %p1072_p7 = pnand %p1071_p4, %p1198_p5 }
 0x2ae   : > { %p1077_p11 = por %p1076_p10, %p1075_p9 }
 0x2af   : > { %p1073_p8 = pneg %p1072_p7 }
 0x2b0   : > { %p1079_p13 = por %p1078_p12, %p1077_p11 }
 0x2b2   : > { %p1080_p0 = pnand %p1079_p13, %p1073_p8 }
 0x2b4   : > { %1083 = shalt.err (!%p1080_p0)
}
 0x2b5   : > { %900 = dma.vmem_to_hbm [thread:$0]  (%p1198_p5), %s1437_s26, 256, %s1435_s7, %s756_s8  }
 0x2b6 PF: > { %p906_p1 = scmp.ge.s32.totalorder %s1118_s21, 2  ;;  %s782_s23 = sand.u32 1, %s1106_s18  }
 0x2b7   : > { %s783_s25 = scalar_lea.sflag [#allocation3], %s782_s23 }
 0x2b8   : > { %p903_p2 = pnand %p906_p1, %p1202_p6 }
 0x2ba   : > { %1101 = dma.done.wait (!%p903_p2), %s783_s25, 256  }
 0x2bb   : > { %1103 = vsyncadd (!%p903_p2), %s783_s25, 4294967040  ;;  %p15_p3 = scmp.ge.s32.totalorder %s1185_s24, 4   ;;  %s1499_s18 = smov %s1110_s19 }
 0x2bc   : > { %s1500_s19 = smov %s1114_s20  ;;  %s1501_s20 = smov %s1196_s27 }
 0x2bd   : > { %s1502_s21 = smov %s1185_s24  ;;  %17 = sbr.rel (!%p15_p3) target bundleno = 3 (0x3), region = 77 }
 0x2c4   :  { %788 = vsyncpa [#allocation3], 1 }
 0x2c5   :  { %790 = vsyncpa [#allocation3 + $0x1], 1 }

</bundles_post_ra>
